<compile_context>
chip_gen: v5e
topology: v5e:2x2
jax: 0.10.0
libtpu: 0.0.40
codegen_flags: <defaults>
</compile_context>

<pallas_src>
import jax
import jax.numpy as jnp
from jax.experimental import pallas as pl
from jax.experimental.pallas import tpu as pltpu


# ----------------------------- kernels ------------------------------------


def _ffn_resident_kernel(x_ref, w1_ref, b1_ref, w2_ref, b2_ref, o_ref):
    # x is cast to the MXU dtype in-kernel (VPU work, hidden under the MXU).
    x = x_ref[...].astype(w1_ref.dtype)
    h = jnp.dot(x, w1_ref[...], preferred_element_type=jnp.float32)
    h = jnp.maximum(h + b1_ref[...], 0.0)
    # TODO(synk): dropout omitted (identity / eval mode); training mode would
    #             use pltpu.prng_seed + pltpu.stateful_bernoulli on `h`.
    y = jnp.dot(h.astype(w2_ref.dtype), w2_ref[...],
                preferred_element_type=jnp.float32)
    o_ref[...] = (y + b2_ref[...]).astype(o_ref.dtype)


def _ffn_streamed_kernel(x_ref, w1_ref, b1_ref, w2_ref, b2_ref, o_ref, acc_ref):
    k = pl.program_id(1)

    @pl.when(k == 0)
    def _():
        acc_ref[...] = jnp.zeros_like(acc_ref)

    x = x_ref[...].astype(w1_ref.dtype)
    h = jnp.dot(x, w1_ref[...], preferred_element_type=jnp.float32)
    h = jnp.maximum(h + b1_ref[...], 0.0)
    # TODO(synk): dropout omitted (identity / eval mode).
    acc_ref[...] += jnp.dot(h.astype(w2_ref.dtype), w2_ref[...],
                            preferred_element_type=jnp.float32)

    @pl.when(k == pl.num_programs(1) - 1)
    def _():
        o_ref[...] = (acc_ref[...] + b2_ref[...]).astype(o_ref.dtype)


# --------------------------- planning helpers ------------------------------


def _round_up(x, m):
    return ((x + m - 1) // m) * m


def _vmem_capacity_bytes():
    """Physical per-core VMEM (128 MiB v5e/v6e, 64 MiB v7x); safe fallback."""
    try:
        cap = int(getattr(pltpu.get_tpu_info(), "vmem_capacity_bytes", 0))
        if cap > 0:
            return cap
    except Exception:
        pass
    return 64 << 20  # conservative fallback (v7x per-TensorCore VMEM)


def _resident_bytes(tm, d_model, dff_pad, x_bytes, out_bytes):
    return (2 * tm * d_model * x_bytes            # x tile (double-buffered)
            + 2 * 2 * d_model * dff_pad * 2       # W1 + W2 bf16 (double-buffered)
            + 2 * (dff_pad + d_model) * 4         # biases
            + 2 * tm * d_model * out_bytes        # out tile (double-buffered)
            + tm * dff_pad * (4 + 2))             # f32 h + its bf16 copy (temporaries)


def _streamed_bytes(tm, bk, d_model, x_bytes, out_bytes):
    return (2 * tm * d_model * x_bytes            # x tile
            + 2 * 2 * bk * d_model * 2            # W1 + W2 blocks, bf16
            + 2 * (bk + d_model) * 4              # bias blocks
            + 2 * tm * d_model * out_bytes        # out tile
            + tm * d_model * 4                    # f32 accumulator scratch
            + tm * bk * (4 + 2))                  # f32 h + its bf16 copy


def _pick_tm(M, tm):
    # Multiple of 16 (bf16 MXU operand tile is (16, 128)).
    tm_eff = max(16, min(_round_up(tm, 16), _round_up(M, 16)))
    # Keep >= 2 tiles on the parallel row axis when the row count allows it,
    # so both v7x TensorCores stay busy.
    if _round_up(M, 16) >= 32:
        tm_eff = min(tm_eff, max(16, _round_up((M + 1) // 2, 16)))
    return tm_eff


# ------------------------------ wrappers -----------------------------------


def prepare_ffn_params(w1_t, b1, w2_t, b2, compute_dtype=jnp.bfloat16):
    """One-time weight prep (hoisted out of the forward path).

    w1_t: [d_model, d_ff], w2_t: [d_ff, d_model]  (transposed nn.Linear weights
    so the kernel computes x @ W directly).  Pads d_ff to a lane multiple with
    zeros (exact: padded columns contribute nothing) and casts to the MXU dtype.
    """
    d_model, d_ff = w1_t.shape
    dff_pad = _round_up(d_ff, 128)
    if dff_pad != d_ff:
        w1_t = jnp.pad(w1_t, ((0, 0), (0, dff_pad - d_ff)))
        b1 = jnp.pad(b1, ((0, dff_pad - d_ff),))
        w2_t = jnp.pad(w2_t, ((0, dff_pad - d_ff), (0, 0)))
    return (w1_t.astype(compute_dtype),
            b1.reshape(1, dff_pad).astype(jnp.float32),
            w2_t.astype(compute_dtype),
            b2.reshape(1, -1).astype(jnp.float32))


def positionwise_ffn(x, w1p, b1p, w2p, b2p, *, tm=512, bk=1024, mode="auto"):
    """x: [batch, seq, d_model]; weights from prepare_ffn_params.

    mode: "auto" (pick from VMEM budget), "resident", or "streamed".
    """
    batch, seq, d_model = x.shape
    dff_pad = w1p.shape[1]
    assert dff_pad % 128 == 0, "use prepare_ffn_params() to pad/cast weights"
    M = batch * seq
    x_bytes = jnp.dtype(x.dtype).itemsize
    out_bytes = x_bytes

    cap = _vmem_capacity_bytes()
    budget = int(cap * 0.85)

    tm_eff = _pick_tm(M, tm)
    m_tiles = pl.cdiv(M, tm_eff)

    if mode == "auto":
        resident = _resident_bytes(tm_eff, d_model, dff_pad,
                                   x_bytes, out_bytes) <= budget
    elif mode == "resident":
        resident = True
    elif mode == "streamed":
        resident = False
    else:
        raise ValueError(f"unknown mode: {mode}")

    x2d = x.reshape(M, d_model)
    flops = 4 * M * d_model * dff_pad

    if resident:
        need = _resident_bytes(tm_eff, d_model, dff_pad, x_bytes, out_bytes)
        cost = pl.CostEstimate(
            flops=flops, transcendentals=0,
            bytes_accessed=(M * d_model * x_bytes
                            + 2 * d_model * dff_pad * 2     # weights fetched ONCE
                            + (dff_pad + d_model) * 4
                            + M * d_model * out_bytes))
        out2d = pl.pallas_call(
            _ffn_resident_kernel,
            out_shape=jax.ShapeDtypeStruct((M, d_model), x.dtype),
            grid_spec=pltpu.PrefetchScalarGridSpec(
                num_scalar_prefetch=0,
                grid=(m_tiles,),
                in_specs=[
                    pl.BlockSpec((tm_eff, d_model), lambda i: (i, 0)),    # x tile
                    # Constant index_map -> weights DMA'd once, stay resident.
                    pl.BlockSpec((d_model, dff_pad), lambda i: (0, 0)),   # W1
                    pl.BlockSpec((1, dff_pad), lambda i: (0, 0)),         # b1
                    pl.BlockSpec((dff_pad, d_model), lambda i: (0, 0)),   # W2
                    pl.BlockSpec((1, d_model), lambda i: (0, 0)),         # b2
                ],
                out_specs=pl.BlockSpec((tm_eff, d_model), lambda i: (i, 0)),
            ),
            compiler_params=pltpu.CompilerParams(
                dimension_semantics=("parallel",),
                vmem_limit_bytes=min(int(need * 1.2) + (4 << 20),
                                     int(cap * 0.98)),
            ),
            cost_estimate=cost,
        )(x2d, w1p, b1p, w2p, b2p)
    else:
        # d_ff block: multiple of 128 that divides the padded d_ff and fits VMEM.
        bk_eff = max(128, min(_round_up(bk, 128), dff_pad))
        while bk_eff > 128 and (
                dff_pad % bk_eff != 0
                or _streamed_bytes(tm_eff, bk_eff, d_model,
                                   x_bytes, out_bytes) > budget):
            bk_eff -= 128
        need = _streamed_bytes(tm_eff, bk_eff, d_model, x_bytes, out_bytes)
        cost = pl.CostEstimate(
            flops=flops, transcendentals=0,
            bytes_accessed=(M * d_model * x_bytes
                            # weights re-streamed once per row tile:
                            + m_tiles * 2 * d_model * dff_pad * 2
                            + m_tiles * (dff_pad + d_model) * 4
                            + M * d_model * out_bytes))
        out2d = pl.pallas_call(
            _ffn_streamed_kernel,
            out_shape=jax.ShapeDtypeStruct((M, d_model), x.dtype),
            grid_spec=pltpu.PrefetchScalarGridSpec(
                num_scalar_prefetch=0,
                grid=(m_tiles, dff_pad // bk_eff),
                in_specs=[
                    pl.BlockSpec((tm_eff, d_model), lambda i, k: (i, 0)),   # x tile
                    pl.BlockSpec((d_model, bk_eff), lambda i, k: (0, k)),   # W1 block
                    pl.BlockSpec((1, bk_eff), lambda i, k: (0, k)),         # b1 block
                    pl.BlockSpec((bk_eff, d_model), lambda i, k: (k, 0)),   # W2 block
                    pl.BlockSpec((1, d_model), lambda i, k: (0, 0)),        # b2
                ],
                out_specs=pl.BlockSpec((tm_eff, d_model), lambda i, k: (i, 0)),
                scratch_shapes=[pltpu.VMEM((tm_eff, d_model), jnp.float32)],
            ),
            compiler_params=pltpu.CompilerParams(
                dimension_semantics=("parallel", "arbitrary"),
                vmem_limit_bytes=min(int(need * 1.2) + (4 << 20),
                                     int(cap * 0.98)),
            ),
            cost_estimate=cost,
        )(x2d, w1p, b1p, w2p, b2p)

    return out2d.reshape(batch, seq, d_model)


# ------------------------------- demo ---------------------------------------


def init_params(key, d_model, d_ff, dtype=jnp.float32):
    """Deterministic synthetic parameters (shapes match nn.Linear init)."""
    k1, k2, k3, k4 = jax.random.split(key, 4)
    bound1 = 1.0 / (d_model ** 0.5)
    bound2 = 1.0 / (d_ff ** 0.5)
    # torch nn.Linear stores weight as [out, in]; we keep the transposed
    # [in, out] form so the kernel computes x @ W directly.
    w1_t = jax.random.uniform(k1, (d_model, d_ff), dtype, -bound1, bound1)
    b1 = jax.random.uniform(k2, (d_ff,), dtype, -bound1, bound1)
    w2_t = jax.random.uniform(k3, (d_ff, d_model), dtype, -bound2, bound2)
    b2 = jax.random.uniform(k4, (d_model,), dtype, -bound2, bound2)
    return w1_t, b1, w2_t, b2


if __name__ == "__main__":
    key = jax.random.PRNGKey(0)
    k_x, k_p = jax.random.split(key)

    # Small but representative: lane-dense d_model (128), d_ff covering
    # multiple streaming blocks, and a row count (18) that is NOT a multiple
    # of the row tile (16) to exercise the ragged / masked edge-block path.
    batch, seq, d_model, d_ff = 2, 9, 128, 512
    x = jax.random.normal(k_x, (batch, seq, d_model), jnp.float32)
    w1_t, b1, w2_t, b2 = init_params(k_p, d_model, d_ff)

    # One-time weight prep (pad + bf16 cast hoisted out of the forward path).
    params = prepare_ffn_params(w1_t, b1, w2_t, b2)

    # Pure-JAX f32 reference (dropout = identity in eval mode). The kernel uses
    # bf16 MXU inputs with f32 accumulation, hence the loose tolerance.
    ref = jnp.maximum(x @ w1_t + b1, 0.0) @ w2_t + b2

    # Resident-weight path (weights fit VMEM -> chosen by "auto" here too).
    out_res = jax.block_until_ready(
        positionwise_ffn(x, *params, mode="auto"))
    assert out_res.shape == (batch, seq, d_model)
    assert jnp.allclose(out_res, ref, atol=3e-2, rtol=3e-2), (
        float(jnp.max(jnp.abs(out_res - ref))))

    # Streamed-weight path (forced), 2 row tiles x 2 d_ff blocks.
    out_str = jax.block_until_ready(
        positionwise_ffn(x, *params, bk=256, mode="streamed"))
    assert out_str.shape == (batch, seq, d_model)
    assert jnp.allclose(out_str, ref, atol=3e-2, rtol=3e-2), (
        float(jnp.max(jnp.abs(out_str - ref))))

    print("KERNEL_OK")
</pallas_src>

<mosaic_0001>
module attributes {stable_mosaic.version = 11 : i64} {
  func.func @_ffn_resident_kernel(%arg0: i32, %arg1: memref<16x128xf32, #tpu.memory_space<vmem>>, %arg2: memref<128x512xbf16, #tpu.memory_space<vmem>>, %arg3: memref<1x512xf32, #tpu.memory_space<vmem>>, %arg4: memref<512x128xbf16, #tpu.memory_space<vmem>>, %arg5: memref<1x128xf32, #tpu.memory_space<vmem>>, %arg6: memref<16x128xf32, #tpu.memory_space<vmem>>) attributes {dimension_semantics = [#tpu.dimension_semantics<parallel>], iteration_bounds = array<i64: 2>, scalar_prefetch = 0 : i64, scratch_operands = 0 : i64, tpu.core_type = #tpu.core_type<tc>, window_params = [{transform_indices = @transform_0, window_bounds = array<i64: 16, 128>}, {pipeline_mode = #tpu.pipeline_mode<synchronous>, transform_indices = @transform_1, window_bounds = array<i64: 128, 512>}, {pipeline_mode = #tpu.pipeline_mode<synchronous>, transform_indices = @transform_2, window_bounds = array<i64: 1, 512>}, {pipeline_mode = #tpu.pipeline_mode<synchronous>, transform_indices = @transform_3, window_bounds = array<i64: 512, 128>}, {pipeline_mode = #tpu.pipeline_mode<synchronous>, transform_indices = @transform_4, window_bounds = array<i64: 1, 128>}, {transform_indices = @transform_5, window_bounds = array<i64: 16, 128>}]} {
    %c0 = arith.constant 0 : index
    %c0_0 = arith.constant 0 : index
    %0 = vector.load %arg1[%c0, %c0_0] : memref<16x128xf32, #tpu.memory_space<vmem>>, vector<16x128xf32>
    %1 = arith.truncf %0 : vector<16x128xf32> to vector<16x128xbf16>
    %c0_1 = arith.constant 0 : index
    %c0_2 = arith.constant 0 : index
    %2 = vector.load %arg2[%c0_1, %c0_2] : memref<128x512xbf16, #tpu.memory_space<vmem>>, vector<128x512xbf16>
    %cst = arith.constant dense<0.000000e+00> : vector<16x512xf32>
    %3 = tpu.matmul %1, %2, %cst {dimension_numbers = #tpu.dot_dimension_numbers<[1], [0], [0], [1], [0, 0, 1, 1], [], []>} : vector<16x128xbf16>, vector<128x512xbf16>, vector<16x512xf32> -> vector<16x512xf32>
    %c0_3 = arith.constant 0 : index
    %c0_4 = arith.constant 0 : index
    %4 = vector.load %arg3[%c0_3, %c0_4] : memref<1x512xf32, #tpu.memory_space<vmem>>, vector<1x512xf32>
    %5 = vector.broadcast %4 : vector<1x512xf32> to vector<16x512xf32>
    %6 = arith.addf %3, %5 : vector<16x512xf32>
    %cst_5 = arith.constant 0.000000e+00 : f32
    %7 = vector.broadcast %cst_5 : f32 to vector<16x512xf32>
    %8 = arith.maximumf %6, %7 : vector<16x512xf32>
    %9 = arith.truncf %8 : vector<16x512xf32> to vector<16x512xbf16>
    %c0_6 = arith.constant 0 : index
    %c0_7 = arith.constant 0 : index
    %10 = vector.load %arg4[%c0_6, %c0_7] : memref<512x128xbf16, #tpu.memory_space<vmem>>, vector<512x128xbf16>
    %cst_8 = arith.constant dense<0.000000e+00> : vector<16x128xf32>
    %11 = tpu.matmul %9, %10, %cst_8 {dimension_numbers = #tpu.dot_dimension_numbers<[1], [0], [0], [1], [0, 0, 1, 1], [], []>} : vector<16x512xbf16>, vector<512x128xbf16>, vector<16x128xf32> -> vector<16x128xf32>
    %c0_9 = arith.constant 0 : index
    %c0_10 = arith.constant 0 : index
    %12 = vector.load %arg5[%c0_9, %c0_10] : memref<1x128xf32, #tpu.memory_space<vmem>>, vector<1x128xf32>
    %13 = vector.broadcast %12 : vector<1x128xf32> to vector<16x128xf32>
    %14 = arith.addf %11, %13 : vector<16x128xf32>
    %c0_11 = arith.constant 0 : index
    %c0_12 = arith.constant 0 : index
    %15 = vector.load %arg6[%c0_11, %c0_12] : memref<16x128xf32, #tpu.memory_space<vmem>>, vector<16x128xf32>
    tpu.vector_store %arg6[%c0_11, %c0_12], %14 {strides = array<i32>} : memref<16x128xf32, #tpu.memory_space<vmem>>, vector<16x128xf32>,
    return
  }
  func.func @transform_0(%arg0: i32) -> (i32, i32) {
    %c0_i32 = arith.constant 0 : i32
    %c0_i32_0 = arith.constant 0 : i32
    return %arg0, %c0_i32 : i32, i32
  }
  func.func @transform_1(%arg0: i32) -> (i32, i32) {
    %c0_i32 = arith.constant 0 : i32
    %c0_i32_0 = arith.constant 0 : i32
    %c0_i32_1 = arith.constant 0 : i32
    return %c0_i32, %c0_i32_0 : i32, i32
  }
  func.func @transform_2(%arg0: i32) -> (i32, i32) {
    %c0_i32 = arith.constant 0 : i32
    %c0_i32_0 = arith.constant 0 : i32
    %c0_i32_1 = arith.constant 0 : i32
    return %c0_i32, %c0_i32_0 : i32, i32
  }
  func.func @transform_3(%arg0: i32) -> (i32, i32) {
    %c0_i32 = arith.constant 0 : i32
    %c0_i32_0 = arith.constant 0 : i32
    %c0_i32_1 = arith.constant 0 : i32
    return %c0_i32, %c0_i32_0 : i32, i32
  }
  func.func @transform_4(%arg0: i32) -> (i32, i32) {
    %c0_i32 = arith.constant 0 : i32
    %c0_i32_0 = arith.constant 0 : i32
    %c0_i32_1 = arith.constant 0 : i32
    return %c0_i32, %c0_i32_0 : i32, i32
  }
  func.func @transform_5(%arg0: i32) -> (i32, i32) {
    %c0_i32 = arith.constant 0 : i32
    %c0_i32_0 = arith.constant 0 : i32
    return %arg0, %c0_i32 : i32, i32
  }
}

</mosaic_0001>

<bundles_post_ra>
// kernel: tpu_custom_call.1
= control target key start
LH: loop header
LB: loop body
LE: loop exit
PB: predicated region body
PF: predicated region fallthrough
CT: control target
= control target key end

     0   :  { %s1943_s0 = inlined_call_operand.hbm [shape: f32[18,128], index: 0, kind: input, shape index: {}]   ;;  %s1944_s1 = inlined_call_operand.hbm [shape: bf16[128,512], index: 1, kind: input, shape index: {}]   ;;  %s1945_s2 = inlined_call_operand.hbm [shape: f32[1,512], index: 2, kind: input, shape index: {}]   ;;  %s1946_s3 = inlined_call_operand.hbm [shape: bf16[512,128], index: 3, kind: input, shape index: {}]   ;;  %s1947_s4 = inlined_call_operand.vmem [shape: f32[1,128], index: 4, kind: input, shape index: {}]   ;;  %s1948_s5 = inlined_call_operand.hbm [shape: f32[18,128], index: 5, kind: output, shape index: {}]  }
   0x1   :  { %1951 = sst [smem:[#allocation15_spill]] %s1944_s1 }
   0x2   :  { %1952 = sst [smem:[#allocation16_spill]] %s1945_s2 }
   0x3   :  { %10 = vsyncpa [#allocation3], 0 }
   0x4   :  { %12 = vsyncpa [#allocation3 + $0x1], 0 }
   0x5   :  { %13 = vsyncpa [#allocation6], 0 }
   0x6   :  { %14 = vsyncpa [#allocation9], 0 }
   0x7   :  { %15 = vsyncpa [#allocation4], 0 }
   0x8   :  { %17 = vsyncpa [#allocation4 + $0x1], 0  ;;  %s1714_s18 = smov 0   ;;  %s1716_s19 = smov 0  }
   0x9   :  { %s1718_s20 = smov 0   ;;  %s1720_s21 = smov 0  }
   0xa LB: > { %s1735_s22 = sadd.s32 4294967295, %s1669_s21   ;;  %s1026_s23 = sadd.s32 4294967294, %s1669_s21   ;;  %s1669_s21 = sphi %s1720_s21, %s1972_s21   ;;  %s1665_s20 = sphi %s1718_s20, %s1971_s20   ;;  %s1661_s19 = sphi %s1716_s19, %s1970_s19   ;;  %s1657_s18 = sphi %s1714_s18, %s1969_s18  }
   0xb   : > { %s1739_s24 = sadd.s32 1, %s1669_s21   ;;  %s30_s25 = sadd.s32 1, %s1665_s20 }
   0xc   : > { %s27_s26 = ssub.s32 %s1669_s21, %s1739_s24  ;;  %p37_p0 = scmp.ne.s32.totalorder %s1665_s20, %s1661_s19 }
   0xd   : > { %p28_p1 = scmp.eq.s32.totalorder %s27_s26, 0  ;;  %p38_p2 = scmp.eq.s32.totalorder %s1669_s21, 0 }
   0xe   : > { %p43_p3 = scmp.ne.s32.totalorder %s1661_s19, %s1657_s18  ;;  %p1950_p4 = scmp.eq.s32.totalorder %s1735_s22, 0 }
   0xf   : > { %s1751_s27 = scalar_select %p28_p1, %s1665_s20, %s30_s25  }
  0x10   : > { %p1753_p5 = por %p38_p2, %p37_p0  ;;  %p1759_p6 = por %p1950_p4, %p43_p3 }
  0x11   : > { %p151_p7 = scmp.eq.s32.totalorder %s1735_s22, 1  ;;  %p157_p8 = scmp.eq.s32.totalorder %s1026_s23, 1 }
  0x12   : > { %p1027_p9 = scmp.ge.s32.totalorder %s1669_s21, 1  ;;  %p164_p10 = scmp.lt.s32.totalorder %s1669_s21, 3 }
  0x13   : > { %p1766_p11 = por %p151_p7, %p37_p0  ;;  %p1770_p12 = por %p157_p8, %p43_p3 }
  0x14   : > { %p1774_p13 = pnand %p1027_p9, %p164_p10  ;;  %s1958_s1 = sld [smem:[#allocation15_spill]] }
  0x15   : > { %s1956_s6 = scalar_select %p1770_p12, 1, 0 }
  0x16   : > { %p1390_p1 = pneg %p1774_p13  ;;  %s1671_s11 = smov [#allocation5]  }
  0x17   : > { %s177_s12 = sshll.u32 %s1671_s11, 4  ;;  %s1960_s2 = sld [smem:[#allocation16_spill]]  ;;  %s178_s12 = int_to_ptr.vmem [resolvable:$true] %s177_s12 }
  0x18   : > { %p1785_p0 = pnand %p1390_p1, %p1950_p4  ;;  %s1672_s17 = smov 256  }
  0x19   : > { %s1673_s23 = smov 16   ;;  %s201_s8 = sshll.u32 %s1946_s3, 4  ;;  %s202_s8 = int_to_ptr.hbm [resolvable:$true] %s201_s8 }
  0x1a   : > { %s175_s10 = sshll.u32 %s1958_s1, 4  ;;  %s1674_s9 = smov [#allocation7]   ;;  %s176_s10 = int_to_ptr.hbm [resolvable:$true] %s175_s10 }
  0x1b   : > { %1393 = dma.hbm_to_vmem [thread:$0]  (!%p1785_p0), %s176_s10, 4096, %s178_s12, [#allocation6], %s1672_s17, %s1672_s17, %s1673_s23  }
  0x1c   : > { %s192_s11 = sshll.u32 %s1674_s9, 4  ;;  %s1675_s14 = smov [#allocation8]   ;;  %s193_s11 = int_to_ptr.vmem [resolvable:$true] %s192_s11 }
  0x1d   : > { %s190_s16 = sshll.u32 %s1960_s2, 4  ;;  %s203_s15 = sshll.u32 %s1675_s14, 4  ;;  %s191_s16 = int_to_ptr.hbm [resolvable:$true] %s190_s16  ;;  %s204_s15 = int_to_ptr.vmem [resolvable:$true] %s203_s15 }
  0x1e   : > { %1396 = dma.hbm_to_vmem [thread:$0]  (!%p1785_p0), %s191_s16, 64, %s193_s11, [#allocation6]  }
  0x1f   : > { %s1676_s1 = smov 64   ;;  %s1677_s2 = smov 4  }
  0x20   : > { %1399 = dma.hbm_to_vmem [thread:$0]  (!%p1785_p0), %s202_s8, 4096, %s204_s15, [#allocation9], %s1676_s1, %s1676_s1, %s1677_s2  }
  0x21   : > { %p1949_p2 = scmp.ge.s32.totalorder %s1669_s21, 2 }
  0x23   : > { %216 = sbr.rel (%p1949_p2) target bundleno = 76 (0x4c), region = 32 }
  0x28   : > { %219 = sbr.rel (!%p1753_p5) target bundleno = 76 (0x4c), region = 36  ;;  %s220_s10 = sand.u32 (%p1753_p5), 1, %s1665_s20  }
  0x29   : > { %s1033_s12 = sshll.u32 (%p1753_p5), %s1669_s21, 1  ;;  %s1032_s16 = sshll.u32 (%p1753_p5), %s220_s10, 4 }
  0x2a   : > { %s226_s17 = ssub.s32 (%p1753_p5), 3, %s1033_s12  ;;  %s1811_s23 = scalar_lea.sflag (%p1753_p5), [#allocation3], %s220_s10 }
  0x2b   : > { %p227_p3 = scmp.lt.s32.totalorder (%p1753_p5), %s226_s17, 2  ;;  %s224_s25 = scalar_lea.vmem (%p1753_p5), [#allocation2], %s1032_s16 }
  0x2d   : > { %s1974_s17 = smov (!%p227_p3, %s226_s17), 2 }
  0x2e   : > { %s1034_s13 = sshll.u32 %s1974_s17, 3 }
  0x2f   : > { %s230_s1 = ssub.s32 16, %s1034_s13 }
  0x30   : > { %s231_s2 = sshll.u32 %s230_s1, 4 }
  0x31   : > { %232 = vsyncadd %s1811_s23, %s231_s2  ;;  %p1814_p5 = scmp.ne.s32.totalorder %s1034_s13, 0  ;;  %s1310_s26 = sshll.u32 %s1669_s21, 4 }
  0x32   : > { %s235_s11 = scalar_lea.hbm %s1943_s0, %s1310_s26  ;;  %s1822_s14 = sshll.u32 %s224_s25, 4  ;;  %s240_s14 = int_to_ptr.vmem [resolvable:$true] %s1822_s14 }
  0x33   : > { %s237_s15 = sshll.u32 %s235_s11, 4  ;;  %s1038_s10 = sshll.u32 %s1974_s17, 7  ;;  %s1825_s15 = int_to_ptr.hbm [resolvable:$true] %s237_s15 }
  0x34   : > { %s1545_s12 = sshra.s32 %s1825_s15, 4  ;;  %s1547_s16 = sshrl.u32 %s1038_s10, 4  ;;  %s1546_s12 = int_to_ptr.hbm [resolvable:$true] %s1545_s12 }
  0x35   : > { %s1552_s13 = scalar_lea.hbm %s1546_s12, %s1547_s16  ;;  %s1556_s25 = scalar_lea.hbm %s1943_s0, 24 }
  0x36   : > { %p1553_p7 = scmp.ne.s32.totalorder %s1546_s12, %s1552_s13  ;;  %p1557_p10 = scmp.lt.s32.totalorder %s1546_s12, %s1943_s0 }
  0x37   : > { %p1558_p1 = scmp.lt.s32.totalorder %s1556_s25, %s1552_s13 }
  0x38   : > { %p1554_p8 = pnand %p1553_p7, %p1814_p5 }
  0x39   : > { %p1559_p0 = por %p1558_p1, %p1557_p10 }
  0x3a   : > { %p1555_p9 = pneg %p1554_p8 }
  0x3c   : > { %p1560_p3 = pnand %p1559_p0, %p1555_p9 }
  0x3e   : > { %1563 = shalt.err (!%p1560_p3)
}
  0x3f   : > { %s1564_s9 = sshra.s32 %s240_s14, 4  ;;  %s1678_s1 = smov [#allocation2]   ;;  %s1565_s9 = int_to_ptr.vmem [resolvable:$true] %s1564_s9 }
  0x40   : > { %s1571_s11 = scalar_lea.vmem %s1565_s9, %s1547_s16  ;;  %s1575_s2 = scalar_lea.vmem %s1678_s1, 32 }
  0x41   : > { %p1572_p7 = scmp.ne.s32.totalorder %s1565_s9, %s1571_s11  ;;  %p1577_p4 = scmp.lt.s32.totalorder %s1575_s2, %s1571_s11 }
  0x43   : > { %p1573_p8 = pnand %p1572_p7, %p1814_p5 }
  0x45   : > { %p1574_p2 = pneg %p1573_p8 }
  0x47   : > { %p1579_p12 = pnand %p1577_p4, %p1574_p2 }
  0x49   : > { %1582 = shalt.err (!%p1579_p12)
}
  0x4a   : > { %s1679_s12 = smov 128   ;;  %s1680_s13 = smov 8  }
  0x4b   : > { %245 = dma.hbm_to_vmem [thread:$0]  (%p1814_p5), %s1825_s15, %s1038_s10, %s240_s14, %s1811_s23, %s1679_s12, %s1679_s12, %s1680_s13  }
  0x4c PF: > { %251 = sbr.rel (%p1774_p13) target bundleno = 446 (0x1be), region = 40  ;;  %s1854_s16 = sand.u32 (!%p1774_p13), 1, %s1661_s19  }
  0x4d   : > { %s1040_s25 = sshll.u32 (!%p1774_p13), %s1854_s16, 4  ;;  %s254_s26 = scalar_lea.sflag (!%p1774_p13), [#allocation3], %s1854_s16 }
  0x4e   : > { %s1860_s8 = scalar_lea.vmem (!%p1774_p13), [#allocation2], %s1040_s25 }
  0x51   : > { %1640 = dma.done.wait (%p1759_p6), %s254_s26, 256  }
  0x52   : > { %1642 = vsyncadd (%p1759_p6), %s254_s26, 4294967040  ;;  %p1962_p4 = scmp.eq.s32.totalorder %s1735_s22, 0 }
  0x54   : > { %1644 = dma.done.wait (%p1962_p4), [#allocation6], 4160   ;;  %p1963_p12 = pmov %p1962_p4 }
  0x55   : > { %p1964_p13 = pmov %p1962_p4 }
  0x56   : > { %1646 = vsyncadd (%p1963_p12), [#allocation6], 4294963136 }
  0x57   : > { %1648 = dma.done.wait (%p1964_p13), [#allocation9], 4096   ;;  %p1965_p2 = pmov %p1962_p4 }
  0x58   : > { %v1159_v0 = vld [vmem:[#allocation5 + $0xe0] sm:$0xf]  ;;  %v1341_v1 = vld [vmem:[#allocation5 + $0xec] sm:$0xf0]  ;;  %v1339_v2 = vld [vmem:[#allocation5 + $0xe4] sm:$0xf] }
  0x59   : > { %1650 = vsyncadd (%p1965_p2), [#allocation9], 4294963200  ;;  %v1160_v3 = vor.u32 %v1341_v1, %v1159_v0  ;;  %v1161_v4 = vld [vmem:[#allocation5 + $0xf0] sm:$0xf0]  ;;  %v1167_v5 = vld [vmem:[#allocation5 + $0xe8] sm:$0xf] }
  0x5a   : > { %v1342_v6 = vld [vmem:[#allocation5 + $0xf4] sm:$0xf0]  ;;  %v1164_v7 = vor.u32 %v1339_v2, %v1161_v4  ;;  %v1340_v9 = vld [vmem:[#allocation5 + $0xec] sm:$0xf]  ;;  %v1169_v10 = vld [vmem:[#allocation5 + $0xf8] sm:$0xf0] }
  0x5b   : > { %v1168_v8 = vor.u32 %v1342_v6, %v1167_v5  ;;  %v1143_v11 = vld [vmem:[#allocation5 + $0xc0] sm:$0xf]  ;;  %515 = vmatpush.bf16.msra.mxu0 %v1160_v3  ;;  %v1172_v12 = vor.u32 %v1340_v9, %v1169_v10  ;;  %v1337_v13 = vld [vmem:[#allocation5 + $0xcc] sm:$0xf0]  ;;  %v1335_v14 = vld [vmem:[#allocation5 + $0xc4] sm:$0xf] }
  0x5c   : > { %v1145_v15 = vld [vmem:[#allocation5 + $0xd0] sm:$0xf0]  ;;  %529 = vmatpush.bf16.msra.mxu1 %v1164_v7  ;;  %v1144_v16 = vor.u32 %v1337_v13, %v1143_v11  ;;  %v1151_v18 = vld [vmem:[#allocation5 + $0xc8] sm:$0xf]  ;;  %v1338_v19 = vld [vmem:[#allocation5 + $0xd4] sm:$0xf0] }
  0x5d   : > { %543 = vmatpush.bf16.msra.mxu2 %v1168_v8  ;;  %v1148_v17 = vor.u32 %v1335_v14, %v1145_v15  ;;  %v1336_v20 = vld [vmem:[#allocation5 + $0xcc] sm:$0xf]  ;;  %557 = vmatpush.bf16.msra.mxu3 %v1172_v12  ;;  %v1152_v21 = vor.u32 %v1338_v19, %v1151_v18  ;;  %v1153_v22 = vld [vmem:[#allocation5 + $0xd8] sm:$0xf0]  ;;  %v1127_v23 = vld [vmem:[#allocation5 + $0xa0] sm:$0xf] }
  0x5e   : > { %v1333_v24 = vld [vmem:[#allocation5 + $0xac] sm:$0xf0]  ;;  %v1156_v25 = vor.u32 %v1336_v20, %v1153_v22  ;;  %v1331_v26 = vld [vmem:[#allocation5 + $0xa4] sm:$0xf]  ;;  %v1129_v27 = vld [vmem:[#allocation5 + $0xb0] sm:$0xf0] }
  0x5f   : > { %v1135_v28 = vld [vmem:[#allocation5 + $0xa8] sm:$0xf]  ;;  %516 = vmatpush.bf16.msra.mxu0 %v1144_v16  ;;  %v1128_v29 = vor.u32 %v1333_v24, %v1127_v23  ;;  %v1334_v30 = vld [vmem:[#allocation5 + $0xb4] sm:$0xf0]  ;;  %v1332_v31 = vld [vmem:[#allocation5 + $0xac] sm:$0xf]  ;;  %v1132_v33 = vor.u32 %v1331_v26, %v1129_v27 }
  0x60   : > { %v1137_v32 = vld [vmem:[#allocation5 + $0xb8] sm:$0xf0]  ;;  %530 = vmatpush.bf16.msra.mxu1 %v1148_v17  ;;  %v1136_v34 = vor.u32 %v1334_v30, %v1135_v28  ;;  %v1111_v35 = vld [vmem:[#allocation5 + $0x80] sm:$0xf]  ;;  %v1329_v36 = vld [vmem:[#allocation5 + $0x8c] sm:$0xf0] }
  0x61   : > { %544 = vmatpush.bf16.msra.mxu2 %v1152_v21  ;;  %v1327_v37 = vld [vmem:[#allocation5 + $0x84] sm:$0xf]  ;;  %558 = vmatpush.bf16.msra.mxu3 %v1156_v25  ;;  %v1140_v38 = vor.u32 %v1332_v31, %v1137_v32  ;;  %v1113_v39 = vld [vmem:[#allocation5 + $0x90] sm:$0xf0]  ;;  %v1119_v40 = vld [vmem:[#allocation5 + $0x88] sm:$0xf]  ;;  %v1112_v44 = vor.u32 %v1329_v36, %v1111_v35 }
  0x62   : > { %v1330_v41 = vld [vmem:[#allocation5 + $0x94] sm:$0xf0]  ;;  %v1328_v42 = vld [vmem:[#allocation5 + $0x8c] sm:$0xf]  ;;  %v1121_v43 = vld [vmem:[#allocation5 + $0x98] sm:$0xf0]  ;;  %v1116_v45 = vor.u32 %v1327_v37, %v1113_v39 }
  0x63   : > { %517 = vmatpush.bf16.msra.mxu0 %v1128_v29  ;;  %v1120_v46 = vor.u32 %v1330_v41, %v1119_v40  ;;  %v1095_v47 = vld [vmem:[#allocation5 + $0x60] sm:$0xf]  ;;  %v1325_v48 = vld [vmem:[#allocation5 + $0x6c] sm:$0xf0]  ;;  %v1323_v49 = vld [vmem:[#allocation5 + $0x64] sm:$0xf]  ;;  %v1124_v50 = vor.u32 %v1328_v42, %v1121_v43 }
  0x64   : > { %531 = vmatpush.bf16.msra.mxu1 %v1132_v33  ;;  %v1097_v51 = vld [vmem:[#allocation5 + $0x70] sm:$0xf0]  ;;  %v1103_v52 = vld [vmem:[#allocation5 + $0x68] sm:$0xf]  ;;  %v1326_v53 = vld [vmem:[#allocation5 + $0x74] sm:$0xf0]  ;;  %v1096_v56 = vor.u32 %v1325_v48, %v1095_v47 }
  0x65   : > { %545 = vmatpush.bf16.msra.mxu2 %v1136_v34  ;;  %559 = vmatpush.bf16.msra.mxu3 %v1140_v38  ;;  %v1324_v54 = vld [vmem:[#allocation5 + $0x6c] sm:$0xf]  ;;  %v1105_v55 = vld [vmem:[#allocation5 + $0x78] sm:$0xf0]  ;;  %v1100_v57 = vor.u32 %v1323_v49, %v1097_v51  ;;  %v1104_v58 = vor.u32 %v1326_v53, %v1103_v52  ;;  %v1079_v59 = vld [vmem:[#allocation5 + $0x40] sm:$0xf] }
  0x66   : > { %v1321_v60 = vld [vmem:[#allocation5 + $0x4c] sm:$0xf0]  ;;  %v1319_v61 = vld [vmem:[#allocation5 + $0x44] sm:$0xf]  ;;  %v1108_v62 = vor.u32 %v1324_v54, %v1105_v55  ;;  %v1081_v63 = vld [vmem:[#allocation5 + $0x50] sm:$0xf0] }
  0x67   : > { %518 = vmatpush.bf16.msra.mxu0 %v1112_v44  ;;  %v1087_v0 = vld [vmem:[#allocation5 + $0x48] sm:$0xf]  ;;  %v1322_v1 = vld [vmem:[#allocation5 + $0x54] sm:$0xf0]  ;;  %v1320_v2 = vld [vmem:[#allocation5 + $0x4c] sm:$0xf]  ;;  %v1080_v4 = vor.u32 %v1321_v60, %v1079_v59  ;;  %v1084_v5 = vor.u32 %v1319_v61, %v1081_v63 }
  0x68   : > { %532 = vmatpush.bf16.msra.mxu1 %v1116_v45  ;;  %v1089_v3 = vld [vmem:[#allocation5 + $0x58] sm:$0xf0]  ;;  %v1088_v6 = vor.u32 %v1322_v1, %v1087_v0  ;;  %v1063_v7 = vld [vmem:[#allocation5 + $0x20] sm:$0xf]  ;;  %v1317_v8 = vld [vmem:[#allocation5 + $0x2c] sm:$0xf0] }
  0x69   : > { %546 = vmatpush.bf16.msra.mxu2 %v1120_v46  ;;  %560 = vmatpush.bf16.msra.mxu3 %v1124_v50  ;;  %v1315_v9 = vld [vmem:[#allocation5 + $0x24] sm:$0xf]  ;;  %v1092_v10 = vor.u32 %v1320_v2, %v1089_v3  ;;  %v1065_v11 = vld [vmem:[#allocation5 + $0x30] sm:$0xf0]  ;;  %v1071_v12 = vld [vmem:[#allocation5 + $0x28] sm:$0xf]  ;;  %v1064_v16 = vor.u32 %v1317_v8, %v1063_v7 }
  0x6a   : > { %v1318_v13 = vld [vmem:[#allocation5 + $0x34] sm:$0xf0]  ;;  %v1316_v14 = vld [vmem:[#allocation5 + $0x2c] sm:$0xf]  ;;  %v1073_v15 = vld [vmem:[#allocation5 + $0x38] sm:$0xf0]  ;;  %v1068_v17 = vor.u32 %v1315_v9, %v1065_v11 }
  0x6b   : > { %519 = vmatpush.bf16.msra.mxu0 %v1096_v56  ;;  %v1072_v18 = vor.u32 %v1318_v13, %v1071_v12  ;;  %v1047_v19 = vld [vmem:[#allocation5] sm:$0xf]  ;;  %v1313_v20 = vld [vmem:[#allocation5 + $0xc] sm:$0xf0]  ;;  %v1311_v21 = vld [vmem:[#allocation5 + $0x4] sm:$0xf]  ;;  %v1076_v22 = vor.u32 %v1316_v14, %v1073_v15 }
  0x6c   : > { %533 = vmatpush.bf16.msra.mxu1 %v1100_v57  ;;  %v1049_v23 = vld [vmem:[#allocation5 + $0x10] sm:$0xf0]  ;;  %v1055_v24 = vld [vmem:[#allocation5 + $0x8] sm:$0xf]  ;;  %v1314_v25 = vld [vmem:[#allocation5 + $0x14] sm:$0xf0]  ;;  %v1048_v28 = vor.u32 %v1313_v20, %v1047_v19 }
  0x6d   : > { %547 = vmatpush.bf16.msra.mxu2 %v1104_v58  ;;  %561 = vmatpush.bf16.msra.mxu3 %v1108_v62  ;;  %v1312_v26 = vld [vmem:[#allocation5 + $0xc] sm:$0xf]  ;;  %v1057_v27 = vld [vmem:[#allocation5 + $0x18] sm:$0xf0]  ;;  %v310_v29 = vld [vmem:[%s1860_s8] sm:$0xff]  ;;  %v1052_v31 = vor.u32 %v1311_v21, %v1049_v23  ;;  %v1056_v32 = vor.u32 %v1314_v25, %v1055_v24  ;;  %s299_s17 = scalar_lea.vmem [#allocation10], %s1040_s25 }
  0x6e   : > { %v311_v30 = vld [vmem:[%s1860_s8 + $0x8] sm:$0xff]  ;;  %v1060_v33 = vor.u32 %v1312_v26, %v1057_v27  ;;  %v345_v3 = vld [vmem:[#allocation7] sm:$0xf]  ;;  %s902_s23 = scalar_lea.sflag [#allocation4], %s1854_s16  ;;  %s1302_s28 = sshll.u32 (%p1766_p11), %s1735_s22, 1 }
  0x6f   : > { %520 = vmatpush.bf16.msra.mxu0 %v1080_v4  ;;  %v1350_v34 = vld [vmem:[#allocation8 + $0x38] sm:$0xff]  ;;  %v312_v35 = vpack.c.bf16 %v311_v30, %v310_v29  ;;  %v1349_v38 = vld [vmem:[#allocation8 + $0x30] sm:$0xff]  ;;  %v1348_v42 = vld [vmem:[#allocation8 + $0x28] sm:$0xff]  ;;  %v348_v7 = vperm.slane %v345_v3, 1  ;;  %v350_v19 = vperm.slane %v345_v3, 3  ;;  %s910_s14 = ssub.s32 (%p1766_p11), 3, %s1302_s28 }
  0x70   : > { %534 = vmatpush.bf16.msra.mxu1 %v1084_v5  ;;  %v1358_v36 = vld [vmem:[#allocation8 + $0x78] sm:$0xff]  ;;  %v1357_v40 = vld [vmem:[#allocation8 + $0x70] sm:$0xff]  ;;  %v1356_v44 = vld [vmem:[#allocation8 + $0x68] sm:$0xff]  ;;  %v347_v5 = vperm.slane %v345_v3, 0  ;;  %p911_p6 = scmp.lt.s32.totalorder (%p1766_p11), %s910_s14, 2 }
  0x71   : > { %548 = vmatpush.bf16.msra.mxu2 %v1088_v6  ;;  %562 = vmatpush.bf16.msra.mxu3 %v1092_v10  ;;  %v1366_v37 = vld [vmem:[#allocation8 + $0xb8] sm:$0xff]  ;;  %v1365_v41 = vld [vmem:[#allocation8 + $0xb0] sm:$0xff]  ;;  %v1364_v45 = vld [vmem:[#allocation8 + $0xa8] sm:$0xff] }
  0x72   : > { %v1374_v39 = vld [vmem:[#allocation8 + $0xf8] sm:$0xff]  ;;  %v1373_v43 = vld [vmem:[#allocation8 + $0xf0] sm:$0xff]  ;;  %v1347_v46 = vld [vmem:[#allocation8 + $0x20] sm:$0xff] }
  0x73   : > { %521 = vmatpush.bf16.msra.mxu0 %v1064_v16  ;;  %v1372_v47 = vld [vmem:[#allocation8 + $0xe8] sm:$0xff]  ;;  %v1355_v48 = vld [vmem:[#allocation8 + $0x60] sm:$0xff]  ;;  %v1346_v49 = vld [vmem:[#allocation8 + $0x18] sm:$0xff] }
  0x74   : > { %535 = vmatpush.bf16.msra.mxu1 %v1068_v17  ;;  %v1354_v50 = vld [vmem:[#allocation8 + $0x58] sm:$0xff]  ;;  %v1363_v51 = vld [vmem:[#allocation8 + $0xa0] sm:$0xff]  ;;  %v1345_v53 = vld [vmem:[#allocation8 + $0x10] sm:$0xff]  ;;  %v349_v17 = vperm.slane %v345_v3, 2 }
  0x75   : > { %549 = vmatpush.bf16.msra.mxu2 %v1072_v18  ;;  %563 = vmatpush.bf16.msra.mxu3 %v1076_v22  ;;  %v1371_v52 = vld [vmem:[#allocation8 + $0xe0] sm:$0xff]  ;;  %v1353_v54 = vld [vmem:[#allocation8 + $0x50] sm:$0xff]  ;;  %v1362_v55 = vld [vmem:[#allocation8 + $0x98] sm:$0xff] }
  0x76   : > { %v1370_v56 = vld [vmem:[#allocation8 + $0xd8] sm:$0xff]  ;;  %v1344_v57 = vld [vmem:[#allocation8 + $0x8] sm:$0xff]  ;;  %v1361_v59 = vld [vmem:[#allocation8 + $0x90] sm:$0xff] }
  0x77   : > { %522 = vmatpush.bf16.msra.mxu0 %v1048_v28  ;;  %v1352_v58 = vld [vmem:[#allocation8 + $0x48] sm:$0xff]  ;;  %v1369_v60 = vld [vmem:[#allocation8 + $0xd0] sm:$0xff]  ;;  %v1343_v61 = vld [vmem:[#allocation8] sm:$0xff] }
  0x78   : > { %536 = vmatpush.bf16.msra.mxu1 %v1052_v31  ;;  %v1351_v62 = vld [vmem:[#allocation8 + $0x40] sm:$0xff]  ;;  %v1360_v63 = vld [vmem:[#allocation8 + $0x88] sm:$0xff] }
  0x79   : > { %550 = vmatpush.bf16.msra.mxu2 %v1056_v32  ;;  %564 = vmatpush.bf16.msra.mxu3 %v1060_v33  ;;  %v1368_v0 = vld [vmem:[#allocation8 + $0xc8] sm:$0xff]  ;;  %v1359_v1 = vld [vmem:[#allocation8 + $0x80] sm:$0xff] }
  0x7a   : > { %523 = vmatmul.bf16.vlgmr.msra.gmra.mxu0 %v312_v35  ;;  %v1367_v2 = vld [vmem:[#allocation8 + $0xc0] sm:$0xff] }
  0x7b   : > { %843 = vmatpush.bf16.msrb.mxu0 %v1350_v34  ;;  %537 = vmatmul.bf16.vlgmr.msra.gmra.mxu1 %v312_v35 }
  0x7c   : > { %857 = vmatpush.bf16.msrb.mxu1 %v1358_v36  ;;  %551 = vmatmul.bf16.vlgmr.msra.gmra.mxu2 %v312_v35 }
  0x7d   : > { %565 = vmatmul.bf16.vlgmr.msra.gmra.mxu3 %v312_v35  ;;  %871 = vmatpush.bf16.msrb.mxu2 %v1366_v37  ;;  %v1454_v37 = vld [vmem:[%s1947_s4] ss:$0 sm:$0xff] }
  0x7e   : > { %885 = vmatpush.bf16.msrb.mxu3 %v1374_v39 }
  0x7f   : > { %844 = vmatpush.bf16.msrb.mxu0 %v1349_v38 }
  0x80   : > { %858 = vmatpush.bf16.msrb.mxu1 %v1357_v40 }
  0x81   : > { %872 = vmatpush.bf16.msrb.mxu2 %v1365_v41 }
  0x82   : > { %886 = vmatpush.bf16.msrb.mxu3 %v1373_v43 }
  0x83   : > { %845 = vmatpush.bf16.msrb.mxu0 %v1348_v42 }
  0x84   : > { %859 = vmatpush.bf16.msrb.mxu1 %v1356_v44 }
  0x85   : > { %873 = vmatpush.bf16.msrb.mxu2 %v1364_v45 }
  0x86   : > { %887 = vmatpush.bf16.msrb.mxu3 %v1372_v47 }
  0x87   : > { %846 = vmatpush.bf16.msrb.mxu0 %v1347_v46 }
  0x88   : > { %860 = vmatpush.bf16.msrb.mxu1 %v1355_v48 }
  0x89   : > { %874 = vmatpush.bf16.msrb.mxu2 %v1363_v51 }
  0x8a   : > { %888 = vmatpush.bf16.msrb.mxu3 %v1371_v52 }
  0x8b   : > { %847 = vmatpush.bf16.msrb.mxu0 %v1346_v49 }
  0x8c   : > { %861 = vmatpush.bf16.msrb.mxu1 %v1354_v50 }
  0x8d   : > { %875 = vmatpush.bf16.msrb.mxu2 %v1362_v55 }
  0x8e   : > { %889 = vmatpush.bf16.msrb.mxu3 %v1370_v56 }
  0x8f   : > { %848 = vmatpush.bf16.msrb.mxu0 %v1345_v53 }
  0x90   : > { %862 = vmatpush.bf16.msrb.mxu1 %v1353_v54 }
  0x91   : > { %876 = vmatpush.bf16.msrb.mxu2 %v1361_v59 }
  0x92   : > { %890 = vmatpush.bf16.msrb.mxu3 %v1369_v60 }
  0x93   : > { %849 = vmatpush.bf16.msrb.mxu0 %v1344_v57 }
  0x94   : > { %863 = vmatpush.bf16.msrb.mxu1 %v1352_v58 }
  0x95   : > { %877 = vmatpush.bf16.msrb.mxu2 %v1360_v63 }
  0x96   : > { %891 = vmatpush.bf16.msrb.mxu3 %v1368_v0 }
  0x97   : > { %850 = vmatpush.bf16.msrb.mxu0 %v1343_v61 }
  0x98   : > { %864 = vmatpush.bf16.msrb.mxu1 %v1351_v62 }
  0x99   : > { %878 = vmatpush.bf16.msrb.mxu2 %v1359_v1 }
  0x9a   : > { %892 = vmatpush.bf16.msrb.mxu3 %v1367_v2 }
  0xf7   : > { %v524_v4 = vpop.f32.mrf.mxu0 }
  0xf8   : > { %v538_v6 = vpop.f32.mrf.mxu1  ;;  %v525_v8 = vadd.f32 %v524_v4, %v347_v5 }
  0xf9   : > { %v539_v9 = vadd.f32 %v538_v6, %v348_v7 }
  0xfa   : > { %v571_v13 = vmax.f32 %v525_v8, 0.0 }
  0xfb   : > { %v572_v16 = vmax.f32 %v539_v9, 0.0 }
  0xff   : > { %v552_v10 = vpop.f32.mrf.mxu2  ;;  %v526_v12 = vpop.f32.mrf.mxu0 }
 0x100   : > { %v566_v11 = vpop.f32.mrf.mxu3  ;;  %v527_v14 = vadd.f32 %v526_v12, %v347_v5  ;;  %v540_v15 = vpop.f32.mrf.mxu1  ;;  %v553_v23 = vadd.f32 %v552_v10, %v349_v17 }
 0x101   : > { %v541_v18 = vadd.f32 %v540_v15, %v348_v7  ;;  %v567_v25 = vadd.f32 %v566_v11, %v350_v19 }
 0x102   : > { %v575_v20 = vmax.f32 %v527_v14, 0.0  ;;  %v573_v30 = vmax.f32 %v553_v23, 0.0 }
 0x103   : > { %v576_v21 = vmax.f32 %v541_v18, 0.0  ;;  %v574_v32 = vmax.f32 %v567_v25, 0.0 }
 0x104   : > { %v579_v22 = vpack.c.bf16 %v575_v20, %v571_v13 }
 0x105   : > { %v580_v24 = vpack.c.bf16 %v576_v21, %v572_v16 }
 0x106   : > { %851 = vmatmul.bf16.vlgmr.msrb.gmra.mxu0 %v579_v22 }
 0x107   : > { %v554_v26 = vpop.f32.mrf.mxu2  ;;  %865 = vmatmul.bf16.vlgmr.msrb.gmra.mxu1 %v580_v24 }
 0x108   : > { %v555_v27 = vadd.f32 %v554_v26, %v349_v17  ;;  %v568_v28 = vpop.f32.mrf.mxu3 }
 0x109   : > { %v569_v29 = vadd.f32 %v568_v28, %v350_v19 }
 0x10a   : > { %v577_v31 = vmax.f32 %v555_v27, 0.0 }
 0x10b   : > { %v578_v33 = vmax.f32 %v569_v29, 0.0 }
 0x10c   : > { %v581_v34 = vpack.c.bf16 %v577_v31, %v573_v30 }
 0x10d   : > { %v582_v35 = vpack.c.bf16 %v578_v33, %v574_v32 }
 0x10e   : > { %879 = vmatmul.bf16.vlgmr.msrb.gmra.mxu2 %v581_v34 }
 0x10f   : > { %893 = vmatmul.bf16.vlgmr.msrb.gmra.mxu3 %v582_v35 }
 0x183   : > { %v852_v36 = vpop.f32.mrf.mxu0 }
 0x184   : > { %v853_v38 = vadd.f32 %v1454_v37, %v852_v36  ;;  %v866_v39 = vpop.f32.mrf.mxu1 }
 0x186   : > { %v867_v40 = vadd.f32 %v866_v39, %v853_v38 }
 0x18b   : > { %v854_v41 = vpop.f32.mrf.mxu0 }
 0x18c   : > { %v855_v45 = vadd.f32 %v1454_v37, %v854_v41  ;;  %v868_v47 = vpop.f32.mrf.mxu1 }
 0x18e   : > { %v869_v48 = vadd.f32 %v868_v47, %v855_v45 }
 0x191   : > { %v880_v42 = vpop.f32.mrf.mxu2 }
 0x192   : > { %v881_v43 = vadd.f32 %v880_v42, %v867_v40  ;;  %v894_v44 = vpop.f32.mrf.mxu3 }
 0x194   : > { %v895_v46 = vadd.f32 %v894_v44, %v881_v43 }
 0x196   : > { %899 = vst [vmem:[%s299_s17] sm:$0xff] %v895_v46 }
 0x199   : > { %v882_v49 = vpop.f32.mrf.mxu2 }
 0x19a   : > { %v883_v50 = vadd.f32 %v882_v49, %v869_v48  ;;  %v896_v51 = vpop.f32.mrf.mxu3  ;;  %908 = sbr.rel (!%p1766_p11) target bundleno = 446 (0x1be), region = 60 }
 0x19c   : > { %v897_v52 = vadd.f32 %v896_v51, %v883_v50 }
 0x19e   : > { %900 = vst [vmem:[%s299_s17 + $0x8] sm:$0xff] %v897_v52 }
 0x19f   : > { %s1976_s14 = smov (!%p911_p6, %s910_s14), 2 }
 0x1a0   : > { %s1303_s15 = sshll.u32 %s1976_s14, 3 }
 0x1a1   : > { %s914_s10 = ssub.s32 16, %s1303_s15 }
 0x1a2   : > { %s915_s9 = sshll.u32 %s914_s10, 4 }
 0x1a3   : > { %916 = vsyncadd %s902_s23, %s915_s9  ;;  %p1890_p5 = scmp.ne.s32.totalorder %s1303_s15, 0  ;;  %s1375_s30 = sshll.u32 %s1735_s22, 4 }
 0x1a4   : > { %s919_s12 = scalar_lea.hbm %s1948_s5, %s1375_s30  ;;  %s921_s13 = sshll.u32 %s299_s17, 4  ;;  %s1898_s13 = int_to_ptr.vmem [resolvable:$true] %s921_s13 }
 0x1a5   : > { %s923_s25 = sshll.u32 %s919_s12, 4  ;;  %s1307_s26 = sshll.u32 %s1976_s14, 7  ;;  %s1900_s25 = int_to_ptr.hbm [resolvable:$true] %s923_s25 }
 0x1a6   : > { %s1584_s8 = sshra.s32 %s1898_s13, 4  ;;  %s1586_s29 = sshrl.u32 %s1307_s26, 4  ;;  %s1585_s8 = int_to_ptr.vmem [resolvable:$true] %s1584_s8 }
 0x1a7   : > { %s1591_s7 = scalar_lea.vmem %s1585_s8, %s1586_s29  ;;  %s1681_s22 = smov [#allocation10]  }
 0x1a8   : > { %p1592_p11 = scmp.ne.s32.totalorder %s1585_s8, %s1591_s7  ;;  %s1595_s28 = scalar_lea.vmem %s1681_s22, 32 }
 0x1a9   : > { %p1597_p1 = scmp.lt.s32.totalorder %s1595_s28, %s1591_s7 }
 0x1aa   : > { %p1593_p9 = pnand %p1592_p11, %p1890_p5 }
 0x1ac   : > { %p1594_p10 = pneg %p1593_p9 }
 0x1ae   : > { %p1599_p0 = pnand %p1597_p1, %p1594_p10 }
 0x1b0   : > { %1602 = shalt.err (!%p1599_p0)
}
 0x1b1   : > { %s1603_s17 = sshra.s32 %s1900_s25, 4  ;;  %s1614_s30 = scalar_lea.hbm %s1948_s5, 24  ;;  %s1604_s17 = int_to_ptr.hbm [resolvable:$true] %s1603_s17 }
 0x1b2   : > { %s1610_s15 = scalar_lea.hbm %s1604_s17, %s1586_s29  ;;  %p1615_p4 = scmp.lt.s32.totalorder %s1604_s17, %s1948_s5 }
 0x1b3   : > { %p1611_p3 = scmp.ne.s32.totalorder %s1604_s17, %s1610_s15  ;;  %p1616_p12 = scmp.lt.s32.totalorder %s1614_s30, %s1610_s15 }
 0x1b5   : > { %p1612_p7 = pnand %p1611_p3, %p1890_p5  ;;  %p1617_p13 = por %p1616_p12, %p1615_p4 }
 0x1b7   : > { %p1613_p8 = pneg %p1612_p7 }
 0x1b9   : > { %p1618_p2 = pnand %p1617_p13, %p1613_p8 }
 0x1bb   : > { %1621 = shalt.err (!%p1618_p2)
}
 0x1bc   : > { %s1682_s12 = smov 128   ;;  %s1683_s8 = smov 8  }
 0x1bd   : > { %929 = dma.vmem_to_hbm [thread:$0]  (%p1890_p5), %s1898_s13, %s1307_s26, %s1900_s25, %s902_s23, %s1682_s12, %s1682_s12, %s1683_s8  }
 0x1be PF: > { %s938_s29 = sand.u32 1, %s1657_s18   ;;  %p1967_p6 = scmp.ne.s32.totalorder %s1956_s6, 0 }
 0x1bf   : > { %p1968_p11 = scmp.ge.s32.totalorder %s1669_s21, 2  ;;  %s939_s7 = scalar_lea.sflag [#allocation4], %s938_s29 }
 0x1c1   : > { %p1401_p9 = pnand %p1968_p11, %p1967_p6 }
 0x1c3   : > { %p1402_p10 = pneg %p1401_p9 }
 0x1c5   : > { %1652 = dma.done.wait (%p1402_p10), %s939_s7, 256  }
 0x1c6   : > { %1654 = vsyncadd (%p1402_p10), %s939_s7, 4294967040  ;;  %p20_p1 = scmp.ge.s32.totalorder %s1739_s24, 4   ;;  %s1969_s18 = smov %s1661_s19 }
 0x1c7   : > { %s1970_s19 = smov %s1665_s20  ;;  %s1971_s20 = smov %s1751_s27 }
 0x1c8   : > { %s1972_s21 = smov %s1739_s24  ;;  %22 = sbr.rel (!%p20_p1) target bundleno = 10 (0xa), region = 97 }
 0x1cd   :  { %945 = vsyncpa [#allocation3], 1 }
 0x1ce   :  { %947 = vsyncpa [#allocation3 + $0x1], 1 }
 0x1cf   :  { %948 = vsyncpa [#allocation6], 1 }
 0x1d0   :  { %949 = vsyncpa [#allocation9], 1 }
 0x1d1   :  { %950 = vsyncpa [#allocation4], 1 }
 0x1d2   :  { %952 = vsyncpa [#allocation4 + $0x1], 1 }

</bundles_post_ra>
